<compile_context>
chip_gen: v7x
topology: tpu7x:2x2x1
jax: 0.10.0
libtpu: 0.0.40
codegen_flags: <defaults>
</compile_context>

<pallas_src>
import jax
import jax.numpy as jnp
from jax import lax
from jax.experimental import pallas as pl
from jax.experimental.pallas import tpu as pltpu


def _graph_local_attention_kernel(x_ref, w1_ref, b1_ref, w2_ref, out_ref, wts_ref):
    # x: (N, H), w1: (H, M), b1: (1, M), w2: (1, M) row
    # out: (1, H), wts: (1, N)
    n = x_ref.shape[0]

    x = x_ref[...]                       # native dtype (f32 here; bf16 also OK)
    x_f32 = x.astype(jnp.float32)

    # --- projection MLP: Linear1 + ReLU on MXU/VPU ---
    h = jnp.dot(x, w1_ref[...], preferred_element_type=jnp.float32)
    h = jnp.maximum(h + b1_ref[...].astype(jnp.float32), 0.0)            # (N, M)

    # --- Linear2 (M -> 1): degenerate contraction done on VPU + lane reduce,
    #     not the MXU. The final scalar bias b2 is intentionally omitted:
    #     softmax over the node axis is shift-invariant, so it cannot change
    #     the returned weights or outputs.
    energy = jnp.sum(h * w2_ref[...].astype(jnp.float32),
                     axis=1, keepdims=True)                              # (N, 1)

    # --- softmax over the node axis (dim=0) ---
    m = jnp.max(energy, axis=0, keepdims=True)
    e = jnp.exp(energy - m)
    denom = jnp.sum(e, axis=0, keepdims=True)
    w = e * pl.reciprocal(denom, approx=False)                           # (N, 1)

    # --- weighted sum over nodes (VPU mul + sublane reduce; fine at small N;
    #     for large tiled N prefer out = w_row @ x on the MXU) ---
    out_ref[...] = jnp.sum(x_f32 * w, axis=0, keepdims=True).astype(out_ref.dtype)

    # --- lane-dense (1, N) weights store: fold the (N, 1) column into a row
    #     with a one-hot mask (2-D iota + sublane reduce) -- no explicit
    #     transpose/relayout needed, and the store is an unmasked row write.
    rid = lax.broadcasted_iota(jnp.int32, (n, n), 0)
    cid = lax.broadcasted_iota(jnp.int32, (n, n), 1)
    onehot = (rid == cid).astype(jnp.float32)                            # (N, N)
    wts_ref[...] = jnp.sum(onehot * w, axis=0, keepdims=True).astype(wts_ref.dtype)


def graph_local_attention_batched(x, w1, b1, w2, b2=None):
    """Batched forward.

    x:  (B, N, H) float32
    w1: (H, M)   (transposed PyTorch Linear(H, M).weight)
    b1: (M,) or (1, M)
    w2: (M,) / (M, 1) / (1, M)
    b2: ignored (softmax shift-invariance makes it a no-op) - kept for parity.

    Returns (outputs (B, H), weights (B, N)).
    """
    del b2  # mathematical no-op under softmax over the node axis
    B, N, H = x.shape
    M = w1.shape[1]
    b1_row = jnp.asarray(b1, jnp.float32).reshape(1, M)
    w2_row = jnp.asarray(w2, jnp.float32).reshape(1, M)

    out, wts = pl.pallas_call(
        _graph_local_attention_kernel,
        out_shape=(
            jax.ShapeDtypeStruct((B, 1, H), jnp.float32),
            jax.ShapeDtypeStruct((B, 1, N), jnp.float32),
        ),
        grid=(B,),
        in_specs=[
            # one graph per grid step; batch dim squeezed out of the kernel view
            pl.BlockSpec((None, N, H), lambda b: (b, 0, 0)),
            # shared parameters: full-array blocks, same tile every step
            pl.BlockSpec((H, M), lambda b: (0, 0)),
            pl.BlockSpec((1, M), lambda b: (0, 0)),
            pl.BlockSpec((1, M), lambda b: (0, 0)),
        ],
        out_specs=(
            pl.BlockSpec((None, 1, H), lambda b: (b, 0, 0)),
            pl.BlockSpec((None, 1, N), lambda b: (b, 0, 0)),
        ),
        compiler_params=pltpu.CompilerParams(
            # independent graphs -> shard the batch across TCs (v7x megacore)
            dimension_semantics=("parallel",),
        ),
    )(x, w1, b1_row, w2_row)

    return out[:, 0, :], wts[:, 0, :]


def graph_local_attention(encoder_outputs, w1, b1, w2, b2=None):
    """Single-graph forward matching the PyTorch module: (N, H) -> ((H,), (N,))."""
    out, wts = graph_local_attention_batched(encoder_outputs[None], w1, b1, w2, b2)
    return out[0], wts[0]


if __name__ == "__main__":
    # Small shapes consistent with the module: B graphs of N nodes, hidden_dim % 5 == 0.
    B = 4
    N = 8
    hidden_dim = 40
    mid = hidden_dim // 5  # 8

    key = jax.random.PRNGKey(0)
    kx, k1, kb1, k2, kb2 = jax.random.split(key, 5)

    x = jax.random.normal(kx, (B, N, hidden_dim), dtype=jnp.float32)
    w1 = jax.random.normal(k1, (hidden_dim, mid), dtype=jnp.float32) * 0.1
    b1 = jax.random.normal(kb1, (mid,), dtype=jnp.float32) * 0.1
    w2 = jax.random.normal(k2, (mid,), dtype=jnp.float32) * 0.1
    b2 = jax.random.normal(kb2, (), dtype=jnp.float32) * 0.1

    # --- batched kernel ---
    outputs, weights = graph_local_attention_batched(x, w1, b1, w2, b2)
    jax.block_until_ready((outputs, weights))

    # --- pure-JAX reference (keeps b2 to demonstrate it is a softmax no-op) ---
    h_ref = jnp.maximum(jnp.einsum("bnh,hm->bnm", x, w1) + b1, 0.0)
    energy_ref = jnp.einsum("bnm,m->bn", h_ref, w2) + b2
    weights_ref = jax.nn.softmax(energy_ref, axis=1)
    outputs_ref = jnp.einsum("bn,bnh->bh", weights_ref, x)

    assert outputs.shape == (B, hidden_dim)
    assert weights.shape == (B, N)
    assert jnp.allclose(outputs, outputs_ref, atol=1e-5, rtol=1e-5)
    assert jnp.allclose(weights, weights_ref, atol=1e-6, rtol=1e-5)

    # --- single-graph path matching the PyTorch forward exactly ---
    out_single, wts_single = graph_local_attention(x[0], w1, b1, w2, b2)
    jax.block_until_ready((out_single, wts_single))
    assert out_single.shape == (hidden_dim,)
    assert wts_single.shape == (N,)
    assert jnp.allclose(out_single, outputs_ref[0], atol=1e-5, rtol=1e-5)
    assert jnp.allclose(wts_single, weights_ref[0], atol=1e-6, rtol=1e-5)

    print("KERNEL_OK")
</pallas_src>

<mosaic_0001>
module attributes {stable_mosaic.version = 11 : i64} {
  func.func @_graph_local_attention_kernel(%arg0: i32, %arg1: memref<1x8x40xf32, #tpu.memory_space<vmem>>, %arg2: memref<40x8xf32, #tpu.memory_space<vmem>>, %arg3: memref<1x8xf32, #tpu.memory_space<vmem>>, %arg4: memref<1x8xf32, #tpu.memory_space<vmem>>, %arg5: memref<1x1x40xf32, #tpu.memory_space<vmem>>, %arg6: memref<1x1x8xf32, #tpu.memory_space<vmem>>) attributes {dimension_semantics = [#tpu.dimension_semantics<parallel>], iteration_bounds = array<i64: 4>, scalar_prefetch = 0 : i64, scratch_operands = 0 : i64, tpu.core_type = #tpu.core_type<tc>, window_params = [{transform_indices = @transform_0, window_bounds = array<i64: 1, 8, 40>}, {pipeline_mode = #tpu.pipeline_mode<synchronous>, transform_indices = @transform_1, window_bounds = array<i64: 40, 8>}, {pipeline_mode = #tpu.pipeline_mode<synchronous>, transform_indices = @transform_2, window_bounds = array<i64: 1, 8>}, {pipeline_mode = #tpu.pipeline_mode<synchronous>, transform_indices = @transform_3, window_bounds = array<i64: 1, 8>}, {transform_indices = @transform_4, window_bounds = array<i64: 1, 1, 40>}, {transform_indices = @transform_5, window_bounds = array<i64: 1, 1, 8>}]} {
    %c0 = arith.constant 0 : index
    %c0_0 = arith.constant 0 : index
    %c0_1 = arith.constant 0 : index
    %0 = vector.load %arg1[%c0, %c0_0, %c0_1] : memref<1x8x40xf32, #tpu.memory_space<vmem>>, vector<1x8x40xf32>
    %1 = vector.shape_cast %0 : vector<1x8x40xf32> to vector<8x40xf32>
    %c0_2 = arith.constant 0 : index
    %c0_3 = arith.constant 0 : index
    %2 = vector.load %arg2[%c0_2, %c0_3] : memref<40x8xf32, #tpu.memory_space<vmem>>, vector<40x8xf32>
    %cst = arith.constant dense<0.000000e+00> : vector<8x8xf32>
    %3 = tpu.matmul %1, %2, %cst {dimension_numbers = #tpu.dot_dimension_numbers<[1], [0], [0], [1], [0, 0, 1, 1], [], []>} : vector<8x40xf32>, vector<40x8xf32>, vector<8x8xf32> -> vector<8x8xf32>
    %c0_4 = arith.constant 0 : index
    %c0_5 = arith.constant 0 : index
    %4 = vector.load %arg3[%c0_4, %c0_5] : memref<1x8xf32, #tpu.memory_space<vmem>>, vector<1x8xf32>
    %5 = vector.broadcast %4 : vector<1x8xf32> to vector<8x8xf32>
    %6 = arith.addf %3, %5 : vector<8x8xf32>
    %cst_6 = arith.constant 0.000000e+00 : f32
    %7 = vector.broadcast %cst_6 : f32 to vector<8x8xf32>
    %8 = arith.maximumf %6, %7 : vector<8x8xf32>
    %c0_7 = arith.constant 0 : index
    %c0_8 = arith.constant 0 : index
    %9 = vector.load %arg4[%c0_7, %c0_8] : memref<1x8xf32, #tpu.memory_space<vmem>>, vector<1x8xf32>
    %10 = vector.broadcast %9 : vector<1x8xf32> to vector<8x8xf32>
    %11 = arith.mulf %8, %10 : vector<8x8xf32>
    %cst_9 = arith.constant dense<0.000000e+00> : vector<8xf32>
    %12 = vector.multi_reduction <add>, %11, %cst_9 [1] : vector<8x8xf32> to vector<8xf32>
    %13 = vector.shape_cast %12 : vector<8xf32> to vector<8x1xf32>
    %cst_10 = arith.constant dense<0xFF800000> : vector<1xf32>
    %14 = vector.multi_reduction <maximumf>, %13, %cst_10 [0] : vector<8x1xf32> to vector<1xf32>
    %15 = vector.shape_cast %14 : vector<1xf32> to vector<1x1xf32>
    %16 = vector.broadcast %15 : vector<1x1xf32> to vector<8x1xf32>
    %17 = arith.subf %13, %16 : vector<8x1xf32>
    %18 = math.exp %17 : vector<8x1xf32>
    %cst_11 = arith.constant dense<0.000000e+00> : vector<1xf32>
    %19 = vector.multi_reduction <add>, %18, %cst_11 [0] : vector<8x1xf32> to vector<1xf32>
    %20 = vector.shape_cast %19 : vector<1xf32> to vector<1x1xf32>
    %21 = tpu.reciprocal %20 : vector<1x1xf32> -> vector<1x1xf32>
    %22 = vector.broadcast %21 : vector<1x1xf32> to vector<8x1xf32>
    %23 = arith.mulf %18, %22 : vector<8x1xf32>
    %24 = vector.broadcast %23 : vector<8x1xf32> to vector<8x40xf32>
    %25 = arith.mulf %1, %24 : vector<8x40xf32>
    %cst_12 = arith.constant dense<0.000000e+00> : vector<40xf32>
    %26 = vector.multi_reduction <add>, %25, %cst_12 [0] : vector<8x40xf32> to vector<40xf32>
    %27 = vector.shape_cast %26 : vector<40xf32> to vector<1x40xf32>
    %c0_13 = arith.constant 0 : index
    %c0_14 = arith.constant 0 : index
    %c0_15 = arith.constant 0 : index
    %28 = vector.load %arg5[%c0_13, %c0_14, %c0_15] : memref<1x1x40xf32, #tpu.memory_space<vmem>>, vector<1x1x40xf32>
    %29 = vector.shape_cast %28 : vector<1x1x40xf32> to vector<1x40xf32>
    %30 = vector.shape_cast %27 : vector<1x40xf32> to vector<1x1x40xf32>
    tpu.vector_store %arg5[%c0_13, %c0_14, %c0_15], %30 {strides = array<i32>} : memref<1x1x40xf32, #tpu.memory_space<vmem>>, vector<1x1x40xf32>,
    %31 = tpu.iota {dimensions = array<i32: 0>} : vector<8x8xi32>
    %32 = tpu.iota {dimensions = array<i32: 1>} : vector<8x8xi32>
    %33 = arith.cmpi eq, %31, %32 : vector<8x8xi32>
    %34 = arith.extui %33 : vector<8x8xi1> to vector<8x8xi32>
    %35 = arith.sitofp %34 : vector<8x8xi32> to vector<8x8xf32>
    %36 = vector.broadcast %23 : vector<8x1xf32> to vector<8x8xf32>
    %37 = arith.mulf %35, %36 : vector<8x8xf32>
    %cst_16 = arith.constant dense<0.000000e+00> : vector<8xf32>
    %38 = vector.multi_reduction <add>, %37, %cst_16 [0] : vector<8x8xf32> to vector<8xf32>
    %39 = vector.shape_cast %38 : vector<8xf32> to vector<1x8xf32>
    %c0_17 = arith.constant 0 : index
    %c0_18 = arith.constant 0 : index
    %c0_19 = arith.constant 0 : index
    %40 = vector.load %arg6[%c0_17, %c0_18, %c0_19] : memref<1x1x8xf32, #tpu.memory_space<vmem>>, vector<1x1x8xf32>
    %41 = vector.shape_cast %40 : vector<1x1x8xf32> to vector<1x8xf32>
    %42 = vector.shape_cast %39 : vector<1x8xf32> to vector<1x1x8xf32>
    tpu.vector_store %arg6[%c0_17, %c0_18, %c0_19], %42 {strides = array<i32>} : memref<1x1x8xf32, #tpu.memory_space<vmem>>, vector<1x1x8xf32>,
    return
  }
  func.func @transform_0(%arg0: i32) -> (i32, i32, i32) {
    %c0_i32 = arith.constant 0 : i32
    %c0_i32_0 = arith.constant 0 : i32
    %c0_i32_1 = arith.constant 0 : i32
    return %arg0, %c0_i32, %c0_i32_0 : i32, i32, i32
  }
  func.func @transform_1(%arg0: i32) -> (i32, i32) {
    %c0_i32 = arith.constant 0 : i32
    %c0_i32_0 = arith.constant 0 : i32
    %c0_i32_1 = arith.constant 0 : i32
    return %c0_i32, %c0_i32_0 : i32, i32
  }
  func.func @transform_2(%arg0: i32) -> (i32, i32) {
    %c0_i32 = arith.constant 0 : i32
    %c0_i32_0 = arith.constant 0 : i32
    %c0_i32_1 = arith.constant 0 : i32
    return %c0_i32, %c0_i32_0 : i32, i32
  }
  func.func @transform_3(%arg0: i32) -> (i32, i32) {
    %c0_i32 = arith.constant 0 : i32
    %c0_i32_0 = arith.constant 0 : i32
    %c0_i32_1 = arith.constant 0 : i32
    return %c0_i32, %c0_i32_0 : i32, i32
  }
  func.func @transform_4(%arg0: i32) -> (i32, i32, i32) {
    %c0_i32 = arith.constant 0 : i32
    %c0_i32_0 = arith.constant 0 : i32
    %c0_i32_1 = arith.constant 0 : i32
    return %arg0, %c0_i32, %c0_i32_0 : i32, i32, i32
  }
  func.func @transform_5(%arg0: i32) -> (i32, i32, i32) {
    %c0_i32 = arith.constant 0 : i32
    %c0_i32_0 = arith.constant 0 : i32
    %c0_i32_1 = arith.constant 0 : i32
    return %arg0, %c0_i32, %c0_i32_0 : i32, i32, i32
  }
}

</mosaic_0001>

<bundles_post_ra>
// kernel: tpu_custom_call.1
= control target key start
LH: loop header
LB: loop body
LE: loop exit
PB: predicated region body
PF: predicated region fallthrough
CT: control target
= control target key end

     0   :  { %11 = vsyncpa [#allocation3], 0  ;;  %s865_s0 = inlined_call_operand.vmem [shape: f32[4,8,40], index: 0, kind: input, shape index: {}]   ;;  %s866_s1 = inlined_call_operand.vmem [shape: f32[40,8], index: 1, kind: input, shape index: {}]   ;;  %s867_s2 = inlined_call_operand.vmem [shape: f32[1,8], index: 2, kind: input, shape index: {}]   ;;  %s868_s3 = inlined_call_operand.vmem [shape: f32[1,8], index: 3, kind: input, shape index: {}]   ;;  %s869_s4 = inlined_call_operand.hbm [shape: f32[4,1,40], index: 4, kind: output, shape index: {0}]   ;;  %s870_s5 = inlined_call_operand.hbm [shape: f32[4,1,8], index: 5, kind: output, shape index: {1}]  }
   0x1   :  { %13 = vsyncpa [#allocation3 + $0x1], 0 }
   0x2   :  { %14 = vsyncpa [#allocation5], 0 }
   0x3   :  { %16 = vsyncpa [#allocation5 + $0x1], 0  ;;  %s706_s18 = smov 0   ;;  %s708_s19 = smov 0  }
   0x4   :  { %s710_s20 = smov 0   ;;  %s712_s21 = smov 0  }
   0x5 LB: > { %s727_s22 = sadd.s32 4294967295, %s669_s21   ;;  %s486_s23 = sadd.s32 4294967294, %s669_s21   ;;  %s669_s21 = sphi %s712_s21, %s876_s21   ;;  %s665_s20 = sphi %s710_s20, %s875_s20   ;;  %s661_s19 = sphi %s708_s19, %s874_s19   ;;  %s657_s18 = sphi %s706_s18, %s873_s18  }
   0x6   : > { %s731_s24 = sadd.s32 1, %s669_s21   ;;  %s118_s25 = sadd.s32 1, %s665_s20 }
   0x7   : > { %s115_s26 = ssub.s32 %s669_s21, %s731_s24  ;;  %p128_p0 = scmp.ne.s32.totalorder %s665_s20, %s661_s19 }
   0x8   : > { %p116_p1 = scmp.eq.s32.totalorder %s115_s26, 0  ;;  %p129_p2 = scmp.eq.s32.totalorder %s727_s22, 3 }
   0x9   : > { %p134_p3 = scmp.ne.s32.totalorder %s661_s19, %s657_s18  ;;  %p135_p4 = scmp.eq.s32.totalorder %s486_s23, 3 }
   0xa   : > { %s742_s27 = scalar_select %p116_p1, %s665_s20, %s118_s25  }
   0xb   : > { %p744_p5 = por %p129_p2, %p128_p0  ;;  %p748_p6 = por %p135_p4, %p134_p3 }
   0xc   : > { %p489_p7 = scmp.ge.s32.totalorder %s669_s21, 1  ;;  %p195_p8 = scmp.lt.s32.totalorder %s669_s21, 5 }
   0xe   : > { %p196_p9 = pnand %p489_p7, %p195_p8 }
   0xf   : > { %v230_v0 = vld [vmem:[%s866_s1] sm:$0xff] (!%p196_p9)  ;;  %v231_v1 = vld [vmem:[%s866_s1 + $0x8] sm:$0xff] (!%p196_p9)  ;;  %v232_v2 = vld [vmem:[%s866_s1 + $0x10] sm:$0xff] (!%p196_p9)  ;;  %v671_v3 = vmov (!%p196_p9), 0.0|0.0   ;;  %vm672_vm0 = vmmov (!%p196_p9), 0   ;;  %v673_v6 = vmov (!%p196_p9), 0.0   ;;  %v356_v34 = vlaneseq (!%p196_p9) }
  0x10   : > { %199 = sbr.rel (%p196_p9) target bundleno = 494 (0x1ee), region = 36  ;;  %518 = vmatprep.subr.bf16.mxu0 (!%p196_p9), %v671_v3  ;;  %v519_v4 = vpack.c.bf16 (!%p196_p9), %v231_v1, %v230_v0  ;;  %v233_v5 = vld [vmem:[%s866_s1 + $0x18] sm:$0xff] (!%p196_p9)  ;;  %515 = vmatprep.mubr.msk.f32.mxu0 (!%p196_p9), %vm672_vm0, %v673_v6  ;;  %p225_p10 = scmp.lt.s32.totalorder (!%p196_p9), %s727_s22, 3  ;;  %v234_v8 = vld [vmem:[%s866_s1 + $0x20] sm:$0xff] (!%p196_p9)  ;;  %vm242_vm1 = vcmask (!%p196_p9), 326656   ;;  %vm325_vm2 = vcmask (!%p196_p9), 64512  }
  0x11   : > { %v522_v7 = vpack.c.bf16 (!%p196_p9), %v233_v5, %v232_v2  ;;  %v491_v10 = vld [vmem:[%s867_s2] ss:$0 sm:$0xff] (!%p196_p9)  ;;  %v357_v35 = vshrl.u32 (!%p196_p9), %v356_v34, 7  ;;  %v359_v36 = vand.u32 (!%p196_p9), 127, %v356_v34  ;;  %s785_s8 = sand.u32 (!%p196_p9), 1, %s661_s19   ;;  %s495_s9 = sshll.u32 (!%p196_p9), %s727_s22, 4 }
  0x12   : > { %520 = vmatpush3.bf16.msra.mxu0 (!%p196_p9), %v519_v4  ;;  %v493_v14 = vld [vmem:[%s868_s3] ss:$0 sm:$0xff] (!%p196_p9)  ;;  %s218_s10 = scalar_lea.vmem (!%p196_p9), [#allocation2], %s785_s8  ;;  %s224_s12 = scalar_lea.vmem (!%p196_p9), [#allocation4], %s785_s8  ;;  %vm354_vm4 = vcmask (!%p196_p9), 319488   ;;  %vm371_vm5 = vcmask (!%p196_p9), 57344  }
  0x13   : > { %521 = vmatprep.subr.bf16.mxu0 (!%p196_p9), %v671_v3  ;;  %vm360_vm3 = vcmp.eq.s32.totalorder (!%p196_p9), %v357_v35, %v359_v36  ;;  %s390_s11 = sshll.u32 (!%p196_p9), %s218_s10, 4  ;;  %s793_s16 = scalar_lea.hbm (!%p196_p9), %s869_s4, %s495_s9  ;;  %s795_s11 = int_to_ptr.vmem [resolvable:$true] %s390_s11 }
  0x14   : > { %v494_v38 = vsel (!%p196_p9), %vm360_vm3, 1.0, %v673_v6  ;;  %s800_s23 = scalar_lea.hbm (!%p196_p9), %s870_s5, %s495_s9  ;;  %s374_s25 = scalar_lea.sflag (!%p196_p9), [#allocation3], %s785_s8 }
  0x15   : > { %s575_s26 = scalar_lea.vmem (!%p196_p9), %s795_s11, 16  ;;  %s674_s30 = smov (!%p196_p9), [#allocation2]  }
  0x16   : > { %523 = vmatpush3.bf16.msra.mxu0 (!%p196_p9), %v522_v7  ;;  %p576_p11 = scmp.ne.s32.totalorder (!%p196_p9), %s795_s11, %s575_s26  ;;  %s579_s6 = sshll.u32 (!%p196_p9), %s674_s30, 4  ;;  %s580_s6 = int_to_ptr.vmem [resolvable:$false] %s579_s6 }
  0x17   : > { %s226_s13 = scalar_select %p225_p10, %s727_s22, 3  ;;  %513 = vmatprep.subr.mxu0 %v673_v6 }
  0x18   : > { %p577_p12 = pnand %p576_p11, %p744_p5  ;;  %s581_s7 = scalar_lea.vmem %s580_s6, 32 }
  0x19   : > { %s490_s14 = sshll.u32 %s226_s13, 3  ;;  %s403_s13 = sshll.u32 %s224_s12, 4  ;;  %s802_s13 = int_to_ptr.vmem [resolvable:$true] %s403_s13 }
  0x1a   : > { %s228_s17 = scalar_lea.vmem %s865_s0, %s490_s14  ;;  %514 = vmatpush3.msra.mxu0 %v234_v8  ;;  %p578_p13 = pneg %p577_p12 }
  0x1b   : > { %v229_v9 = vld [vmem:[%s228_s17] sm:$0xff]  ;;  %p582_p0 = scmp.lt.s32.totalorder %s795_s11, %s580_s6  ;;  %p583_p1 = scmp.lt.s32.totalorder %s581_s7, %s575_s26 }
  0x1c   : > { %516 = vmatmul.mubr.msk.f32.vlgmr.msra.gmra.mrb[0].mxu0 %vm242_vm1, %v229_v9 }
  0x1d   : > { %p584_p2 = por %p583_p1, %p582_p0 }
  0x1f   : > { %p585_p3 = pnand %p584_p2, %p578_p13 }
  0xef   : > { %v312_v11 = vpop.f32.mrb[0].mxu0 }
  0xf0   : > { %v313_v12 = vadd.f32 %v491_v10, %v312_v11  ;;  %v517_v13 = vpop.f32.mrb[1].mxu0 }
  0xf2   : > { %v316_v15 = vmax.f32 %v313_v12, 0.0 }
  0xf4   : > { %v324_v16 = vmul.f32 %v493_v14, %v316_v15 }
  0xf6   : > { %v326_v17 = vsel %vm325_vm2, %v324_v16, 0.0 }
  0xf7   : > { %327 = vadd.xlane.f32.xlu0 %v326_v17 }
 0x184   : > { %v328_v18 = vpop.xlane.xlu0 %327 }
 0x185   : > { %v329_v19 = vrot.slane %v328_v18, 4 }
 0x187   : > { %v330_v20 = vmax.f32 %v328_v18, %v329_v19 }
 0x189   : > { %v331_v21 = vrot.slane %v330_v20, 2 }
 0x18b   : > { %v332_v22 = vmax.f32 %v330_v20, %v331_v21 }
 0x18d   : > { %v333_v23 = vrot.slane %v332_v22, 1 }
 0x18f   : > { %v334_v24 = vmax.f32 %v332_v22, %v333_v23 }
 0x191   : > { %v335_v25 = vsub.f32 %v328_v18, %v334_v24 }
 0x193   : > { %v336_v26 = vmul.f32 1.442695, %v335_v25 }
 0x195   : > { %571 = vpow2.f32 %v336_v26 }
 0x19f   : > { %v572_v27 = vpop.eup %571 }
 0x1a0   : > { %v338_v28 = vrot.slane %v572_v27, 4 }
 0x1a2   : > { %v339_v29 = vadd.f32 %v572_v27, %v338_v28 }
 0x1a4   : > { %v340_v30 = vrot.slane %v339_v29, 2 }
 0x1a6   : > { %v341_v31 = vadd.f32 %v340_v30, %v339_v29 }
 0x1a8   : > { %v342_v32 = vrot.slane %v341_v31, 1 }
 0x1aa   : > { %v343_v33 = vadd.f32 %v342_v32, %v341_v31 }
 0x1ac   : > { %573 = vrcp.f32 %v343_v33 }
 0x1b6   : > { %v574_v37 = vpop.eup %573 }
 0x1b7   : > { %v345_v39 = vmul.f32 %v574_v37, %v572_v27 }
 0x1b9   : > { %v346_v40 = vmul.f32 %v345_v39, %v229_v9  ;;  %v363_v41 = vmul.f32 %v494_v38, %v345_v39 }
 0x1bb   : > { %v347_v42 = vsel %vm242_vm1, %v346_v40, 0.0  ;;  %v364_v43 = vsel %vm325_vm2, %v363_v41, 0.0 }
 0x1bc   : > { %v348_v44 = vrot.slane %v347_v42, 4  ;;  %v365_v45 = vrot.slane %v364_v43, 4 }
 0x1be   : > { %v349_v46 = vadd.f32 %v348_v44, %v347_v42  ;;  %v366_v47 = vadd.f32 %v365_v45, %v364_v43 }
 0x1c0   : > { %v350_v48 = vrot.slane %v349_v46, 2  ;;  %v367_v49 = vrot.slane %v366_v47, 2 }
 0x1c2   : > { %v351_v50 = vadd.f32 %v350_v48, %v349_v46  ;;  %v368_v51 = vadd.f32 %v367_v49, %v366_v47 }
 0x1c4   : > { %v352_v52 = vrot.slane %v351_v50, 1  ;;  %v369_v53 = vrot.slane %v368_v51, 1 }
 0x1c6   : > { %v353_v54 = vadd.f32 %v352_v52, %v351_v50  ;;  %v370_v55 = vadd.f32 %v369_v53, %v368_v51 }
 0x1c8   : > { %355 = vst.msk [vmem:[%s218_s10] sm:$0x1] %vm354_vm4, %v353_v54 }
 0x1c9   : > { %372 = vst.msk [vmem:[%s224_s12] sm:$0x1] %vm371_vm5, %v370_v55 }
 0x1ca   : > { %588 = shalt.err (!%p585_p3)
}
 0x1cb   : > { %s589_s9 = scalar_lea.hbm %s793_s16, 16  ;;  %s593_s14 = scalar_lea.hbm %s869_s4, 64 }
 0x1cc   : > { %p590_p4 = scmp.ne.s32.totalorder %s793_s16, %s589_s9  ;;  %p594_p9 = scmp.lt.u32.totalorder %s793_s16, %s869_s4 }
 0x1cd   : > { %p595_p10 = scmp.lt.u32.totalorder %s593_s14, %s589_s9  ;;  %p597_p12 = scmp.lt.u32.totalorder %s589_s9, %s793_s16 }
 0x1ce   : > { %p591_p7 = pnand %p590_p4, %p744_p5 }
 0x1cf   : > { %p596_p11 = por %p595_p10, %p594_p9 }
 0x1d0   : > { %p592_p8 = pneg %p591_p7 }
 0x1d1   : > { %p598_p13 = por %p597_p12, %p596_p11 }
 0x1d3   : > { %p599_p0 = pnand %p598_p13, %p592_p8 }
 0x1d5   : > { %602 = shalt.err (!%p599_p0)
}
 0x1d6   : > { %524 = dma.vmem_to_hbm [thread:$0]  (%p744_p5), %s795_s11, 16, %s793_s16, %s374_s25  }
 0x1d7   : > { %s378_s17 = scalar_lea.sflag [#allocation5], %s785_s8  ;;  %s603_s26 = scalar_lea.vmem %s802_s13, 16 }
 0x1d8   : > { %p604_p1 = scmp.ne.s32.totalorder %s802_s13, %s603_s26  ;;  %s675_s30 = smov [#allocation4]  }
 0x1d9   : > { %s607_s6 = sshll.u32 %s675_s30, 4  ;;  %s608_s6 = int_to_ptr.vmem [resolvable:$false] %s607_s6 }
 0x1da   : > { %p605_p2 = pnand %p604_p1, %p744_p5  ;;  %s609_s7 = scalar_lea.vmem %s608_s6, 32 }
 0x1db   : > { %p610_p4 = scmp.lt.s32.totalorder %s802_s13, %s608_s6  ;;  %p611_p7 = scmp.lt.s32.totalorder %s609_s7, %s603_s26 }
 0x1dc   : > { %p606_p3 = pneg %p605_p2 }
 0x1dd   : > { %p612_p8 = por %p611_p7, %p610_p4 }
 0x1df   : > { %p613_p9 = pnand %p612_p8, %p606_p3 }
 0x1e1   : > { %616 = shalt.err (!%p613_p9)
}
 0x1e2   : > { %s617_s8 = scalar_lea.hbm %s800_s23, 16  ;;  %s621_s25 = scalar_lea.hbm %s870_s5, 64 }
 0x1e3   : > { %p618_p10 = scmp.ne.s32.totalorder %s800_s23, %s617_s8  ;;  %p622_p13 = scmp.lt.u32.totalorder %s800_s23, %s870_s5 }
 0x1e4   : > { %p623_p0 = scmp.lt.u32.totalorder %s621_s25, %s617_s8  ;;  %p625_p2 = scmp.lt.u32.totalorder %s617_s8, %s800_s23 }
 0x1e5   : > { %p619_p11 = pnand %p618_p10, %p744_p5 }
 0x1e6   : > { %p624_p1 = por %p623_p0, %p622_p13 }
 0x1e7   : > { %p620_p12 = pneg %p619_p11 }
 0x1e8   : > { %p626_p3 = por %p625_p2, %p624_p1 }
 0x1ea   : > { %p627_p4 = pnand %p626_p3, %p620_p12 }
 0x1ec   : > { %630 = shalt.err (!%p627_p4)
}
 0x1ed   : > { %525 = dma.vmem_to_hbm [thread:$0]  (%p744_p5), %s802_s13, 16, %s800_s23, %s378_s17  }
 0x1ee PF: > { %p535_p7 = scmp.ge.s32.totalorder %s669_s21, 2  ;;  %s415_s12 = sand.u32 1, %s657_s18  }
 0x1ef   : > { %s416_s14 = scalar_lea.sflag [#allocation3], %s415_s12 }
 0x1f0   : > { %p529_p8 = pnand %p535_p7, %p748_p6 }
 0x1f2   : > { %648 = dma.done.wait (!%p529_p8), %s416_s14, 16  }
 0x1f3   : > { %650 = vsyncadd (!%p529_p8), %s416_s14, 4294967280  ;;  %s424_s15 = scalar_lea.sflag [#allocation5], %s415_s12 }
 0x1f4   : > { %652 = dma.done.wait (!%p529_p8), %s424_s15, 16  }
 0x1f5   : > { %654 = vsyncadd (!%p529_p8), %s424_s15, 4294967280  ;;  %p19_p5 = scmp.ge.s32.totalorder %s731_s24, 6   ;;  %s873_s18 = smov %s661_s19 }
 0x1f6   : > { %s874_s19 = smov %s665_s20  ;;  %s875_s20 = smov %s742_s27 }
 0x1f7   : > { %s876_s21 = smov %s731_s24  ;;  %21 = sbr.rel (!%p19_p5) target bundleno = 5 (0x5), region = 88 }
 0x1fe   :  { %428 = vsyncpa [#allocation3], 1 }
 0x1ff   :  { %430 = vsyncpa [#allocation3 + $0x1], 1 }
 0x200   :  { %431 = vsyncpa [#allocation5], 1 }
 0x201   :  { %433 = vsyncpa [#allocation5 + $0x1], 1 }

</bundles_post_ra>
